<compile_context>
chip_gen: v7x
topology: tpu7x:2x2x1
jax: 0.10.0
libtpu: 0.0.40
codegen_flags: <defaults>
</compile_context>

<pallas_src>
import functools
import math

import jax
import jax.numpy as jnp
from jax.experimental import pallas as pl
from jax.experimental.pallas import tpu as pltpu

_TARGET_TILE_BYTES = 4 * 1024 * 1024
_VMEM_LIMIT_BYTES = 32 * 1024 * 1024


# --------------------------------------------------------------------------- #
# Kernels
# --------------------------------------------------------------------------- #
def _pe_add_3d_kernel(x_ref, pe_ref, o_ref):
    # x_ref: (ts, bb, D); pe_ref: (ts, 1, D)  -> size-1 sublane broadcast.
    x = x_ref[...].astype(jnp.float32)
    pe = pe_ref[...].astype(jnp.float32)
    o_ref[...] = (x + pe).astype(o_ref.dtype)


def _pe_add_folded_kernel(x_ref, pe_ref, o_ref, *, batch):
    # x_ref: (ts, B*D); pe_ref: (ts, D) -> repeat B times along the lane axis.
    x = x_ref[...].astype(jnp.float32)
    pe = jnp.tile(pe_ref[...].astype(jnp.float32), (1, batch))
    o_ref[...] = (x + pe).astype(o_ref.dtype)


# --------------------------------------------------------------------------- #
# Positional table (identical to the PyTorch __init__ buffer, stored (max_len, D))
# --------------------------------------------------------------------------- #
def make_positional_encoding_table(d_model: int, max_len: int = 5000) -> jnp.ndarray:
    position = jnp.arange(max_len, dtype=jnp.float32)[:, None]             # (max_len, 1)
    div_term = jnp.exp(
        jnp.arange(0, d_model, 2, dtype=jnp.float32) * (-math.log(10000.0) / d_model)
    )                                                                       # (d_model//2,)
    angles = position * div_term                                            # (max_len, d_model//2)
    pe = jnp.zeros((max_len, d_model), dtype=jnp.float32)
    pe = pe.at[:, 0::2].set(jnp.sin(angles))
    pe = pe.at[:, 1::2].set(jnp.cos(angles))
    return pe


# --------------------------------------------------------------------------- #
# Tiling helpers
# --------------------------------------------------------------------------- #
def _round_up(x, m):
    return ((x + m - 1) // m) * m


def _round_down(x, m):
    return (x // m) * m


def _sublane_mult(dtype) -> int:
    # 8 rows for 32-bit, 16 for bf16/fp16, 32 for int8/fp8 (packed sublanes).
    return max(8, 32 // jnp.dtype(dtype).itemsize)


def _choose_block_rows(S, row_bytes, mult, block_rows=None,
                       target_tile_bytes=_TARGET_TILE_BYTES):
    if block_rows is None:
        block_rows = max(mult, _round_down(target_tile_bytes // max(row_bytes, 1), mult))
    # Megacore: guarantee >= 2 seq tiles whenever the sequence is long enough,
    # so both TensorCores (and their HBM bandwidth) are used on v7x.
    if S >= 2 * mult:
        block_rows = min(block_rows, _round_up((S + 1) // 2, mult))
    if block_rows >= S:
        return S                                    # one block == full extent (legal)
    return max(mult, _round_down(block_rows, mult))


def _choose_batch_block(B, D, itemsize, mult, target_tile_bytes=_TARGET_TILE_BYTES):
    # Keep the full batch unless even `mult` seq rows of a full-batch tile
    # would overflow the per-tile budget (prevents VMEM OOM for very wide B*D).
    if B <= mult or B * D * itemsize * mult <= target_tile_bytes:
        return B
    bb = _round_down(target_tile_bytes // (mult * D * itemsize), mult)
    bb = max(mult, bb)
    return B if bb >= B else bb


# --------------------------------------------------------------------------- #
# Forward
# --------------------------------------------------------------------------- #
def positional_encoding_forward(x: jnp.ndarray, pe: jnp.ndarray, *,
                                block_rows: int | None = None,
                                donate_x: bool = False,
                                min_pallas_elements: int = 16384,
                                target_tile_bytes: int = _TARGET_TILE_BYTES) -> jnp.ndarray:
    """x: (seq, batch, d_model); pe: (max_len, d_model). Returns x + pe[:seq]."""
    S, B, D = x.shape
    assert pe.shape[0] >= S and pe.shape[1] == D

    pe_rows = pe[:S]                                   # (S, D), stays f32
    out_dtype = jnp.promote_types(x.dtype, pe.dtype)   # PyTorch-style promotion

    if S * B * D < min_pallas_elements:
        # Tiny inputs: launch / grid-step overhead dominates; let XLA fuse.
        return x + pe_rows[:, None, :]

    itemsize = jnp.dtype(out_dtype).itemsize
    x_mult = _sublane_mult(x.dtype)

    alias = {0: 0} if (donate_x and out_dtype == x.dtype) else {}

    # 3-D path whenever D is lane-aligned, or when B*D is so wide that even an
    # 8-row folded tile would blow past the VMEM budget.
    use_3d = (D % 128 == 0) or (B * D * itemsize * x_mult > target_tile_bytes)

    if use_3d:
        bb = _choose_batch_block(B, D, itemsize, x_mult, target_tile_bytes)
        # ts is a leading (non-sublane) dim in the 3-D layout -> no hard
        # alignment constraint; round to 8 for tidy DMA anyway.
        ts = _choose_block_rows(S, bb * D * itemsize, 8, block_rows, target_tile_bytes)
        pe3 = pe_rows.reshape(S, 1, D)                 # free reshape
        grid = (pl.cdiv(S, ts), pl.cdiv(B, bb))

        out = pl.pallas_call(
            _pe_add_3d_kernel,
            out_shape=jax.ShapeDtypeStruct((S, B, D), out_dtype),
            grid=grid,
            in_specs=[
                pl.BlockSpec((ts, bb, D), lambda i, j: (i, j, 0)),
                pl.BlockSpec((ts, 1, D), lambda i, j: (i, 0, 0)),   # pe reused per batch tile
            ],
            out_specs=pl.BlockSpec((ts, bb, D), lambda i, j: (i, j, 0)),
            compiler_params=pltpu.CompilerParams(
                dimension_semantics=("parallel", "parallel"),
                vmem_limit_bytes=_VMEM_LIMIT_BYTES,
            ),
            input_output_aliases=alias,
        )(x, pe3)
        return out

    # Folded path (D not a multiple of 128, modest B*D): batch folded into lanes.
    BD = B * D
    x2 = x.reshape(S, BD)                              # free, contiguous reshape
    ts = _choose_block_rows(S, BD * itemsize, x_mult, block_rows, target_tile_bytes)
    grid = (pl.cdiv(S, ts),)

    out2 = pl.pallas_call(
        functools.partial(_pe_add_folded_kernel, batch=B),
        out_shape=jax.ShapeDtypeStruct((S, BD), out_dtype),
        grid=grid,
        in_specs=[
            pl.BlockSpec((ts, BD), lambda i: (i, 0)),
            pl.BlockSpec((ts, D), lambda i: (i, 0)),   # small pe block, tiled in-kernel
        ],
        out_specs=pl.BlockSpec((ts, BD), lambda i: (i, 0)),
        compiler_params=pltpu.CompilerParams(
            dimension_semantics=("parallel",),
            vmem_limit_bytes=_VMEM_LIMIT_BYTES,
        ),
        input_output_aliases=alias,
    )(x2, pe_rows)
    return out2.reshape(S, B, D)


# --------------------------------------------------------------------------- #
# Self-test
# --------------------------------------------------------------------------- #
if __name__ == "__main__":
    key = jax.random.PRNGKey(0)
    k1, k2, k3, k4 = jax.random.split(key, 4)
    max_len = 512

    # 1) 3-D lane-dense path (D multiple of 128), 2 seq tiles via megacore cap.
    d_a = 128
    pe_a = make_positional_encoding_table(d_a, max_len)
    x_a = jax.random.normal(k1, (64, 4, d_a), dtype=jnp.float32)
    out_a = jax.block_until_ready(positional_encoding_forward(x_a, pe_a))
    ref_a = x_a + pe_a[:64][:, None, :]
    assert out_a.shape == x_a.shape and out_a.dtype == x_a.dtype
    assert jnp.allclose(out_a, ref_a, atol=1e-6, rtol=1e-6)

    # 2) Folded path (D=64 < 128): in-kernel pe tile along lanes, multi seq
    #    tiles + ragged last tile (exercises cdiv grid and pipelining).
    d_b = 64
    pe_b = make_positional_encoding_table(d_b, max_len)
    x_b = jax.random.normal(k2, (200, 4, d_b), dtype=jnp.float32)
    out_b = jax.block_until_ready(positional_encoding_forward(x_b, pe_b, block_rows=48))
    ref_b = x_b + pe_b[:200][:, None, :]
    assert jnp.allclose(out_b, ref_b, atol=1e-6, rtol=1e-6)

    # 3) bf16 input -> f32 output (PyTorch-style promotion against f32 pe buffer);
    #    add performed in f32 inside the kernel.
    x_c = jax.random.normal(k3, (64, 4, d_a), dtype=jnp.float32).astype(jnp.bfloat16)
    out_c = jax.block_until_ready(positional_encoding_forward(x_c, pe_a))
    ref_c = x_c.astype(jnp.float32) + pe_a[:64][:, None, :]
    assert out_c.dtype == jnp.float32
    assert jnp.allclose(out_c, ref_c, atol=1e-6, rtol=1e-6)

    # 4) Tiny-shape fallback (no kernel launch) at the module's toy size.
    d_c = 32
    pe_c = make_positional_encoding_table(d_c, 64)
    x_d = jax.random.normal(k4, (8, 2, d_c), dtype=jnp.float32)
    out_d = jax.block_until_ready(positional_encoding_forward(x_d, pe_c))
    ref_d = x_d + pe_c[:8][:, None, :]
    assert jnp.allclose(out_d, ref_d, atol=1e-6, rtol=1e-6)

    print("KERNEL_OK")
</pallas_src>

<mosaic_0001>
module attributes {stable_mosaic.version = 11 : i64} {
  func.func @_pe_add_3d_kernel(%arg0: i32, %arg1: i32, %arg2: memref<32x4x128xf32, #tpu.memory_space<vmem>>, %arg3: memref<32x1x128xf32, #tpu.memory_space<vmem>>, %arg4: memref<32x4x128xf32, #tpu.memory_space<vmem>>) attributes {dimension_semantics = [#tpu.dimension_semantics<parallel>, #tpu.dimension_semantics<parallel>], iteration_bounds = array<i64: 2, 1>, scalar_prefetch = 0 : i64, scratch_operands = 0 : i64, tpu.core_type = #tpu.core_type<tc>, window_params = [{transform_indices = @transform_0, window_bounds = array<i64: 32, 4, 128>}, {transform_indices = @transform_1, window_bounds = array<i64: 32, 1, 128>}, {transform_indices = @transform_2, window_bounds = array<i64: 32, 4, 128>}]} {
    %c0 = arith.constant 0 : index
    %c0_0 = arith.constant 0 : index
    %c0_1 = arith.constant 0 : index
    %0 = vector.load %arg2[%c0, %c0_0, %c0_1] : memref<32x4x128xf32, #tpu.memory_space<vmem>>, vector<32x4x128xf32>
    %c0_2 = arith.constant 0 : index
    %c0_3 = arith.constant 0 : index
    %c0_4 = arith.constant 0 : index
    %1 = vector.load %arg3[%c0_2, %c0_3, %c0_4] : memref<32x1x128xf32, #tpu.memory_space<vmem>>, vector<32x1x128xf32>
    %2 = vector.broadcast %1 : vector<32x1x128xf32> to vector<32x4x128xf32>
    %3 = arith.addf %0, %2 : vector<32x4x128xf32>
    %c0_5 = arith.constant 0 : index
    %c0_6 = arith.constant 0 : index
    %c0_7 = arith.constant 0 : index
    %4 = vector.load %arg4[%c0_5, %c0_6, %c0_7] : memref<32x4x128xf32, #tpu.memory_space<vmem>>, vector<32x4x128xf32>
    tpu.vector_store %arg4[%c0_5, %c0_6, %c0_7], %3 {strides = array<i32>} : memref<32x4x128xf32, #tpu.memory_space<vmem>>, vector<32x4x128xf32>,
    return
  }
  func.func @transform_0(%arg0: i32, %arg1: i32) -> (i32, i32, i32) {
    %c0_i32 = arith.constant 0 : i32
    %c0_i32_0 = arith.constant 0 : i32
    return %arg0, %arg1, %c0_i32 : i32, i32, i32
  }
  func.func @transform_1(%arg0: i32, %arg1: i32) -> (i32, i32, i32) {
    %c0_i32 = arith.constant 0 : i32
    %c0_i32_0 = arith.constant 0 : i32
    %c0_i32_1 = arith.constant 0 : i32
    return %arg0, %c0_i32, %c0_i32_0 : i32, i32, i32
  }
  func.func @transform_2(%arg0: i32, %arg1: i32) -> (i32, i32, i32) {
    %c0_i32 = arith.constant 0 : i32
    %c0_i32_0 = arith.constant 0 : i32
    return %arg0, %arg1, %c0_i32 : i32, i32, i32
  }
}

</mosaic_0001>

<bundles_post_ra>
// kernel: tpu_custom_call.1
= control target key start
LH: loop header
LB: loop body
LE: loop exit
PB: predicated region body
PF: predicated region fallthrough
CT: control target
= control target key end

     0   :  { %7 = vsyncpa [#allocation3], 0  ;;  %s1296_s0 = inlined_call_operand.hbm [shape: f32[64,4,128], index: 0, kind: input, shape index: {}]   ;;  %s1297_s1 = inlined_call_operand.hbm [shape: f32[64,1,128], index: 1, kind: input, shape index: {}]   ;;  %s1298_s2 = inlined_call_operand.hbm [shape: f32[64,4,128], index: 2, kind: output, shape index: {}]  }
   0x1   :  { %9 = vsyncpa [#allocation3 + $0x1], 0 }
   0x2   :  { %10 = vsyncpa [#allocation6], 0 }
   0x3   :  { %12 = vsyncpa [#allocation6 + $0x1], 0 }
   0x4   :  { %13 = vsyncpa [#allocation4], 0 }
   0x5   :  { %15 = vsyncpa [#allocation4 + $0x1], 0  ;;  %s964_s9 = smov 0   ;;  %s966_s10 = smov 0  }
   0x6   :  { %s968_s11 = smov 0   ;;  %s970_s12 = smov 0  }
   0x7   :  { %s972_s13 = smov 0   ;;  %s974_s14 = smov 0  }
   0x8 LB: > { %s665_s15 = sadd.s32 4294967295, %s938_s14   ;;  %s666_s16 = sadd.s32 4294967294, %s938_s14   ;;  %s938_s14 = sphi %s974_s14, %s21_s14   ;;  %s934_s13 = sphi %s972_s13, %s1316_s13   ;;  %s930_s12 = sphi %s970_s12, %s1315_s12   ;;  %s926_s11 = sphi %s968_s11, %s1314_s11   ;;  %s922_s10 = sphi %s966_s10, %s1313_s10   ;;  %s918_s9 = sphi %s964_s9, %s1312_s9  }
   0x9   : > { %s33_s17 = sadd.s32 1, %s934_s13  ;;  %s42_s18 = sadd.s32 1, %s926_s11 }
   0xa   : > { %p35_p0 = scmp.ge.s32.totalorder %s33_s17, 2  ;;  %p49_p1 = scmp.ne.s32.totalorder %s926_s11, %s922_s10 }
   0xb   : > { %p50_p2 = scmp.eq.s32.totalorder %s938_s14, 0  ;;  %p55_p3 = scmp.ne.s32.totalorder %s922_s10, %s918_s9 }
   0xc   : > { %s1318_s17 = smov (%p35_p0, %s33_s17), 0  ;;  %p56_p5 = scmp.eq.s32.totalorder %s665_s15, 0 }
   0xd   : > { %p1005_p4 = por %p50_p2, %p49_p1  ;;  %s37_s20 = ssub.s32 %s934_s13, %s1318_s17 }
   0xe   : > { %p107_p6 = scmp.eq.s32.totalorder %s665_s15, 1  ;;  %p40_p7 = scmp.eq.s32.totalorder %s37_s20, 0 }
   0xf   : > { %p1011_p8 = por %p56_p5, %p55_p3  ;;  %p113_p10 = scmp.eq.s32.totalorder %s666_s16, 1 }
  0x10   : > { %p1015_p9 = por %p107_p6, %p49_p1  ;;  %p736_p13 = scmp.lt.s32.totalorder %s938_s14, 2 }
  0x11   : > { %s1302_s21 = scalar_select %p1011_p8, 1, 0 }
  0x12   : > { %s1303_s22 = scalar_select %p1015_p9, 1, 0 }
  0x13   : > { %s1020_s23 = scalar_select %p40_p7, %s926_s11, %s42_s18  }
  0x14   : > { %p1022_p11 = por %p113_p10, %p55_p3  ;;  %s1029_s25 = sand.u32 1, %s926_s11  }
  0x15   : > { %s669_s26 = sshll.u32 %s1029_s25, 7  ;;  %s716_s27 = sshll.u32 %s934_s13, 11 }
  0x16   : > { %s1304_s24 = scalar_select %p1022_p11, 1, 0 }
  0x17   : > { %s1036_s30 = scalar_lea.hbm %s1296_s0, %s716_s27  ;;  %s137_s3 = scalar_lea.vmem [#allocation2], %s669_s26 }
  0x18   : > { %s145_s4 = sshll.u32 %s137_s3, 4  ;;  %p1042_p0 = pnand %p736_p13, %p1005_p4  ;;  %s1038_s4 = int_to_ptr.vmem [resolvable:$true] %s145_s4 }
  0x19   : > { %s134_s6 = scalar_lea.sflag [#allocation3], %s1029_s25  ;;  %s792_s7 = scalar_lea.hbm %s1036_s30, 2048 }
  0x1a   : > { %p793_p2 = scmp.ne.s32.totalorder %s1036_s30, %s792_s7  ;;  %p794_p3 = pneg %p1042_p0 }
  0x1b   : > { %s797_s16 = scalar_lea.hbm %s1296_s0, 4096  ;;  %p798_p4 = scmp.lt.u32.totalorder %s1036_s30, %s1296_s0 }
  0x1c   : > { %p795_p5 = pnand %p794_p3, %p793_p2  ;;  %p799_p7 = scmp.lt.u32.totalorder %s797_s16, %s792_s7 }
  0x1d   : > { %p801_p13 = scmp.lt.u32.totalorder %s792_s7, %s1036_s30 }
  0x1e   : > { %p796_p6 = pneg %p795_p5  ;;  %p800_p10 = por %p799_p7, %p798_p4 }
  0x20   : > { %p802_p12 = por %p801_p13, %p800_p10 }
  0x22   : > { %p803_p1 = pnand %p802_p12, %p796_p6 }
  0x24   : > { %806 = shalt.err (!%p803_p1)
}
  0x25   : > { %s807_s20 = scalar_lea.vmem %s1038_s4, 2048  ;;  %s940_s26 = smov [#allocation2]  }
  0x26   : > { %p808_p2 = scmp.ne.s32.totalorder %s1038_s4, %s807_s20  ;;  %s812_s27 = sshll.u32 %s940_s26, 4  ;;  %s813_s27 = int_to_ptr.vmem [resolvable:$false] %s812_s27 }
  0x27   : > { %s814_s28 = scalar_lea.vmem %s813_s27, 4096  ;;  %p815_p9 = scmp.lt.s32.totalorder %s1038_s4, %s813_s27 }
  0x28   : > { %p810_p5 = pnand %p808_p2, %p794_p3  ;;  %p816_p4 = scmp.lt.s32.totalorder %s814_s28, %s807_s20 }
  0x2a   : > { %p811_p11 = pneg %p810_p5  ;;  %p817_p7 = por %p816_p4, %p815_p9 }
  0x2c   : > { %p818_p10 = pnand %p817_p7, %p811_p11 }
  0x2e   : > { %821 = shalt.err (!%p818_p10)
}
  0x2f   : > { %s941_s29 = smov 64   ;;  %s942_s3 = smov 4  }
  0x30   : > { %728 = dma.hbm_to_vmem [thread:$0]  (!%p1042_p0), %s1036_s30, 2048, %s1038_s4, %s134_s6, %s941_s29, %s941_s29, %s942_s3  }
  0x31   : > { %p174_p12 = scmp.lt.s32.totalorder %s938_s14, 3  ;;  %s672_s7 = sshll.u32 %s1029_s25, 5 }
  0x32   : > { %s717_s8 = sshll.u32 %s934_s13, 9  ;;  %p1306_p9 = scmp.ge.s32.totalorder %s938_s14, 1 }
  0x33   : > { %s1087_s19 = scalar_lea.hbm %s1297_s1, %s717_s8  ;;  %s159_s20 = scalar_lea.vmem [#allocation5], %s672_s7 }
  0x34   : > { %p1080_p11 = pnand %p1306_p9, %p174_p12  ;;  %s166_s26 = sshll.u32 %s159_s20, 4  ;;  %s1089_s26 = int_to_ptr.vmem [resolvable:$true] %s166_s26 }
  0x35   : > { %s156_s30 = scalar_lea.sflag [#allocation6], %s1029_s25  ;;  %s822_s4 = scalar_lea.hbm %s1087_s19, 512 }
  0x36   : > { %p823_p1 = scmp.ne.s32.totalorder %s1087_s19, %s822_s4  ;;  %s827_s28 = scalar_lea.hbm %s1297_s1, 1024 }
  0x37   : > { %p828_p2 = scmp.lt.u32.totalorder %s1087_s19, %s1297_s1  ;;  %p829_p5 = scmp.lt.u32.totalorder %s827_s28, %s822_s4 }
  0x38   : > { %p825_p6 = pnand %p823_p1, %p794_p3  ;;  %p831_p7 = scmp.lt.u32.totalorder %s822_s4, %s1087_s19 }
  0x39   : > { %p830_p4 = por %p829_p5, %p828_p2 }
  0x3a   : > { %p826_p13 = pneg %p825_p6 }
  0x3b   : > { %p832_p10 = por %p831_p7, %p830_p4 }
  0x3d   : > { %p833_p12 = pnand %p832_p10, %p826_p13 }
  0x3f   : > { %836 = shalt.err (!%p833_p12)
}
  0x40   : > { %s837_s7 = scalar_lea.vmem %s1089_s26, 512  ;;  %s943_s8 = smov [#allocation5]  }
  0x41   : > { %p838_p9 = scmp.ne.s32.totalorder %s1089_s26, %s837_s7  ;;  %s842_s16 = sshll.u32 %s943_s8, 4  ;;  %s843_s16 = int_to_ptr.vmem [resolvable:$false] %s842_s16 }
  0x42   : > { %s844_s18 = scalar_lea.vmem %s843_s16, 1024  ;;  %p845_p8 = scmp.lt.s32.totalorder %s1089_s26, %s843_s16 }
  0x43   : > { %p840_p1 = pnand %p838_p9, %p794_p3  ;;  %p846_p2 = scmp.lt.s32.totalorder %s844_s18, %s837_s7 }
  0x45   : > { %p841_p6 = pneg %p840_p1  ;;  %p847_p5 = por %p846_p2, %p845_p8 }
  0x47   : > { %p848_p4 = pnand %p847_p5, %p841_p6 }
  0x49   : > { %851 = shalt.err (!%p848_p4)
}
  0x4a   : > { %s944_s20 = smov 16   ;;  %s945_s4 = smov 1  }
  0x4b   : > { %731 = dma.hbm_to_vmem [thread:$0]  (!%p1042_p0), %s1087_s19, 512, %s1089_s26, %s156_s30, %s944_s20, %s944_s20, %s945_s4  }
  0x4c   : > { %178 = sbr.rel (%p1080_p11) target bundleno = 142 (0x8e), region = 28  ;;  %s1120_s6 = sand.u32 (!%p1080_p11), 1, %s922_s10  }
  0x4d   : > { %s676_s27 = sshll.u32 (!%p1080_p11), %s1120_s6, 7  ;;  %s181_s28 = scalar_lea.sflag (!%p1080_p11), [#allocation3], %s1120_s6 }
  0x4e   : > { %s1124_s29 = scalar_lea.vmem (!%p1080_p11), [#allocation2], %s676_s27  ;;  %p1308_p8 = scmp.ne.s32.totalorder (!%p1080_p11), %s1302_s21, 0 }
  0x53   : > { %905 = dma.done.wait (%p1308_p8), %s181_s28, 2048  }
  0x54   : > { %907 = vsyncadd (%p1308_p8), %s181_s28, 4294965248  ;;  %s677_s25 = sshll.u32 %s1120_s6, 5  ;;  %s190_s5 = scalar_lea.sflag [#allocation6], %s1120_s6 }
  0x55   : > { %s1132_s15 = scalar_lea.vmem [#allocation5], %s677_s25 }
  0x56   : > { %909 = dma.done.wait (%p1308_p8), %s190_s5, 512  }
  0x57   : > { %911 = vsyncadd (%p1308_p8), %s190_s5, 4294966784  ;;  %s718_s19 = sshll.u32 %s930_s12, 11  ;;  %s1139_s26 = scalar_lea.vmem [#allocation7], %s676_s27  ;;  %v222_v0 = vld [vmem:[%s1124_s29] sm:$0xf] }
  0x58   : > { %s557_s30 = sshll.u32 %s1139_s26, 4  ;;  %v679_v1 = vld [vmem:[%s1132_s15] ss:$0 sm:$0xff]  ;;  %v223_v2 = vld [vmem:[%s1124_s29 + $0x4] sm:$0xf]  ;;  %s1239_s7 = scalar_lea.hbm %s1298_s2, %s718_s19  ;;  %s1243_s30 = int_to_ptr.vmem [resolvable:$true] %s557_s30 }
  0x59   : > { %v478_v3 = vadd.f32 %v679_v1, %v222_v0  ;;  %v680_v4 = vld [vmem:[%s1132_s15 + $0x1] ss:$0 sm:$0xff]  ;;  %v224_v5 = vld [vmem:[%s1124_s29 + $0x8] sm:$0xf]  ;;  %v681_v6 = vld [vmem:[%s1132_s15 + $0x2] ss:$0 sm:$0xff] }
  0x5a   : > { %v479_v7 = vadd.f32 %v680_v4, %v223_v2  ;;  %v480_v8 = vadd.f32 %v681_v6, %v224_v5  ;;  %v225_v9 = vld [vmem:[%s1124_s29 + $0xc] sm:$0xf]  ;;  %v682_v10 = vld [vmem:[%s1132_s15 + $0x3] ss:$0 sm:$0xff]  ;;  %v226_v11 = vld [vmem:[%s1124_s29 + $0x10] sm:$0xf] }
  0x5b   : > { %510 = vst [vmem:[%s1139_s26] sm:$0xf] %v478_v3  ;;  %v481_v12 = vadd.f32 %v682_v10, %v225_v9  ;;  %v683_v13 = vld [vmem:[%s1132_s15 + $0x4] ss:$0 sm:$0xff]  ;;  %v227_v14 = vld [vmem:[%s1124_s29 + $0x14] sm:$0xf]  ;;  %s543_s8 = scalar_lea.sflag [#allocation4], %s1120_s6 }
  0x5c   : > { %v684_v15 = vld [vmem:[%s1132_s15 + $0x5] ss:$0 sm:$0xff]  ;;  %511 = vst [vmem:[%s1139_s26 + $0x4] sm:$0xf] %v479_v7  ;;  %512 = vst [vmem:[%s1139_s26 + $0x8] sm:$0xf] %v480_v8  ;;  %v482_v16 = vadd.f32 %v683_v13, %v226_v11 }
  0x5d   : > { %v483_v17 = vadd.f32 %v684_v15, %v227_v14  ;;  %v228_v18 = vld [vmem:[%s1124_s29 + $0x18] sm:$0xf]  ;;  %v685_v19 = vld [vmem:[%s1132_s15 + $0x6] ss:$0 sm:$0xff]  ;;  %v229_v20 = vld [vmem:[%s1124_s29 + $0x1c] sm:$0xf] }
  0x5e   : > { %513 = vst [vmem:[%s1139_s26 + $0xc] sm:$0xf] %v481_v12  ;;  %v484_v21 = vadd.f32 %v685_v19, %v228_v18  ;;  %v686_v22 = vld [vmem:[%s1132_s15 + $0x7] ss:$0 sm:$0xff]  ;;  %v230_v23 = vld [vmem:[%s1124_s29 + $0x20] sm:$0xf] }
  0x5f   : > { %v687_v24 = vld [vmem:[%s1132_s15 + $0x8] ss:$0 sm:$0xff]  ;;  %514 = vst [vmem:[%s1139_s26 + $0x10] sm:$0xf] %v482_v16  ;;  %515 = vst [vmem:[%s1139_s26 + $0x14] sm:$0xf] %v483_v17  ;;  %v485_v25 = vadd.f32 %v686_v22, %v229_v20 }
  0x60   : > { %v486_v26 = vadd.f32 %v687_v24, %v230_v23  ;;  %v231_v27 = vld [vmem:[%s1124_s29 + $0x24] sm:$0xf]  ;;  %v688_v28 = vld [vmem:[%s1132_s15 + $0x9] ss:$0 sm:$0xff]  ;;  %516 = vst [vmem:[%s1139_s26 + $0x18] sm:$0xf] %v484_v21 }
  0x61   : > { %v232_v29 = vld [vmem:[%s1124_s29 + $0x28] sm:$0xf]  ;;  %v487_v30 = vadd.f32 %v688_v28, %v231_v27  ;;  %v233_v32 = vld [vmem:[%s1124_s29 + $0x2c] sm:$0xf]  ;;  %517 = vst [vmem:[%s1139_s26 + $0x1c] sm:$0xf] %v485_v25 }
  0x62   : > { %v689_v31 = vld [vmem:[%s1132_s15 + $0xa] ss:$0 sm:$0xff]  ;;  %v690_v33 = vld [vmem:[%s1132_s15 + $0xb] ss:$0 sm:$0xff]  ;;  %518 = vst [vmem:[%s1139_s26 + $0x20] sm:$0xf] %v486_v26 }
  0x63   : > { %v488_v34 = vadd.f32 %v689_v31, %v232_v29  ;;  %v489_v35 = vadd.f32 %v690_v33, %v233_v32  ;;  %v234_v36 = vld [vmem:[%s1124_s29 + $0x30] sm:$0xf]  ;;  %v691_v37 = vld [vmem:[%s1132_s15 + $0xc] ss:$0 sm:$0xff]  ;;  %v235_v38 = vld [vmem:[%s1124_s29 + $0x34] sm:$0xf] }
  0x64   : > { %519 = vst [vmem:[%s1139_s26 + $0x24] sm:$0xf] %v487_v30  ;;  %v490_v39 = vadd.f32 %v691_v37, %v234_v36  ;;  %v692_v40 = vld [vmem:[%s1132_s15 + $0xd] ss:$0 sm:$0xff]  ;;  %v236_v41 = vld [vmem:[%s1124_s29 + $0x38] sm:$0xf] }
  0x65   : > { %v693_v42 = vld [vmem:[%s1132_s15 + $0xe] ss:$0 sm:$0xff]  ;;  %520 = vst [vmem:[%s1139_s26 + $0x28] sm:$0xf] %v488_v34  ;;  %521 = vst [vmem:[%s1139_s26 + $0x2c] sm:$0xf] %v489_v35  ;;  %v491_v43 = vadd.f32 %v692_v40, %v235_v38 }
  0x66   : > { %v492_v44 = vadd.f32 %v693_v42, %v236_v41  ;;  %v237_v45 = vld [vmem:[%s1124_s29 + $0x3c] sm:$0xf]  ;;  %v694_v46 = vld [vmem:[%s1132_s15 + $0xf] ss:$0 sm:$0xff]  ;;  %v238_v47 = vld [vmem:[%s1124_s29 + $0x40] sm:$0xf] }
  0x67   : > { %522 = vst [vmem:[%s1139_s26 + $0x30] sm:$0xf] %v490_v39  ;;  %v493_v48 = vadd.f32 %v694_v46, %v237_v45  ;;  %v695_v49 = vld [vmem:[%s1132_s15 + $0x10] ss:$0 sm:$0xff]  ;;  %v239_v50 = vld [vmem:[%s1124_s29 + $0x44] sm:$0xf] }
  0x68   : > { %v696_v51 = vld [vmem:[%s1132_s15 + $0x11] ss:$0 sm:$0xff]  ;;  %523 = vst [vmem:[%s1139_s26 + $0x34] sm:$0xf] %v491_v43  ;;  %524 = vst [vmem:[%s1139_s26 + $0x38] sm:$0xf] %v492_v44  ;;  %v494_v52 = vadd.f32 %v695_v49, %v238_v47 }
  0x69   : > { %v495_v53 = vadd.f32 %v696_v51, %v239_v50  ;;  %v240_v54 = vld [vmem:[%s1124_s29 + $0x48] sm:$0xf]  ;;  %v697_v55 = vld [vmem:[%s1132_s15 + $0x12] ss:$0 sm:$0xff]  ;;  %v241_v56 = vld [vmem:[%s1124_s29 + $0x4c] sm:$0xf] }
  0x6a   : > { %525 = vst [vmem:[%s1139_s26 + $0x3c] sm:$0xf] %v493_v48  ;;  %v496_v57 = vadd.f32 %v697_v55, %v240_v54  ;;  %v698_v58 = vld [vmem:[%s1132_s15 + $0x13] ss:$0 sm:$0xff]  ;;  %v699_v60 = vld [vmem:[%s1132_s15 + $0x14] ss:$0 sm:$0xff] }
  0x6b   : > { %v242_v59 = vld [vmem:[%s1124_s29 + $0x50] sm:$0xf]  ;;  %526 = vst [vmem:[%s1139_s26 + $0x40] sm:$0xf] %v494_v52  ;;  %527 = vst [vmem:[%s1139_s26 + $0x44] sm:$0xf] %v495_v53  ;;  %v497_v61 = vadd.f32 %v698_v58, %v241_v56 }
  0x6c   : > { %v498_v62 = vadd.f32 %v699_v60, %v242_v59  ;;  %v243_v63 = vld [vmem:[%s1124_s29 + $0x54] sm:$0xf]  ;;  %v244_v1 = vld [vmem:[%s1124_s29 + $0x58] sm:$0xf]  ;;  %528 = vst [vmem:[%s1139_s26 + $0x48] sm:$0xf] %v496_v57 }
  0x6d   : > { %v700_v0 = vld [vmem:[%s1132_s15 + $0x15] ss:$0 sm:$0xff]  ;;  %v701_v3 = vld [vmem:[%s1132_s15 + $0x16] ss:$0 sm:$0xff]  ;;  %v245_v4 = vld [vmem:[%s1124_s29 + $0x5c] sm:$0xf] }
  0x6e   : > { %v499_v2 = vadd.f32 %v700_v0, %v243_v63  ;;  %v702_v5 = vld [vmem:[%s1132_s15 + $0x17] ss:$0 sm:$0xff]  ;;  %529 = vst [vmem:[%s1139_s26 + $0x4c] sm:$0xf] %v497_v61  ;;  %530 = vst [vmem:[%s1139_s26 + $0x50] sm:$0xf] %v498_v62  ;;  %v500_v6 = vadd.f32 %v701_v3, %v244_v1 }
  0x6f   : > { %v501_v7 = vadd.f32 %v702_v5, %v245_v4  ;;  %v246_v8 = vld [vmem:[%s1124_s29 + $0x60] sm:$0xf]  ;;  %v703_v9 = vld [vmem:[%s1132_s15 + $0x18] ss:$0 sm:$0xff]  ;;  %v247_v10 = vld [vmem:[%s1124_s29 + $0x64] sm:$0xf] }
  0x70   : > { %531 = vst [vmem:[%s1139_s26 + $0x54] sm:$0xf] %v499_v2  ;;  %v502_v11 = vadd.f32 %v703_v9, %v246_v8  ;;  %v704_v12 = vld [vmem:[%s1132_s15 + $0x19] ss:$0 sm:$0xff]  ;;  %v248_v13 = vld [vmem:[%s1124_s29 + $0x68] sm:$0xf] }
  0x71   : > { %v705_v14 = vld [vmem:[%s1132_s15 + $0x1a] ss:$0 sm:$0xff]  ;;  %532 = vst [vmem:[%s1139_s26 + $0x58] sm:$0xf] %v500_v6  ;;  %533 = vst [vmem:[%s1139_s26 + $0x5c] sm:$0xf] %v501_v7  ;;  %v503_v15 = vadd.f32 %v704_v12, %v247_v10 }
  0x72   : > { %v504_v16 = vadd.f32 %v705_v14, %v248_v13  ;;  %v249_v17 = vld [vmem:[%s1124_s29 + $0x6c] sm:$0xf]  ;;  %v706_v18 = vld [vmem:[%s1132_s15 + $0x1b] ss:$0 sm:$0xff]  ;;  %v250_v19 = vld [vmem:[%s1124_s29 + $0x70] sm:$0xf] }
  0x73   : > { %534 = vst [vmem:[%s1139_s26 + $0x60] sm:$0xf] %v502_v11  ;;  %v505_v20 = vadd.f32 %v706_v18, %v249_v17  ;;  %v707_v21 = vld [vmem:[%s1132_s15 + $0x1c] ss:$0 sm:$0xff]  ;;  %v251_v22 = vld [vmem:[%s1124_s29 + $0x74] sm:$0xf] }
  0x74   : > { %v708_v23 = vld [vmem:[%s1132_s15 + $0x1d] ss:$0 sm:$0xff]  ;;  %535 = vst [vmem:[%s1139_s26 + $0x64] sm:$0xf] %v503_v15  ;;  %536 = vst [vmem:[%s1139_s26 + $0x68] sm:$0xf] %v504_v16  ;;  %v506_v24 = vadd.f32 %v707_v21, %v250_v19 }
  0x75   : > { %v507_v25 = vadd.f32 %v708_v23, %v251_v22  ;;  %v252_v26 = vld [vmem:[%s1124_s29 + $0x78] sm:$0xf]  ;;  %v709_v27 = vld [vmem:[%s1132_s15 + $0x1e] ss:$0 sm:$0xff]  ;;  %537 = vst [vmem:[%s1139_s26 + $0x6c] sm:$0xf] %v505_v20 }
  0x76   : > { %v253_v28 = vld [vmem:[%s1124_s29 + $0x7c] sm:$0xf]  ;;  %v508_v29 = vadd.f32 %v709_v27, %v252_v26  ;;  %538 = vst [vmem:[%s1139_s26 + $0x70] sm:$0xf] %v506_v24  ;;  %s852_s16 = scalar_lea.vmem %s1243_s30, 2048  ;;  %p1309_p3 = scmp.ne.s32.totalorder %s1303_s22, 0 }
  0x77   : > { %v710_v30 = vld [vmem:[%s1132_s15 + $0x1f] ss:$0 sm:$0xff]  ;;  %539 = vst [vmem:[%s1139_s26 + $0x74] sm:$0xf] %v507_v25  ;;  %p853_p0 = scmp.ne.s32.totalorder %s1243_s30, %s852_s16  ;;  %s946_s12 = smov [#allocation7]  }
  0x78   : > { %v509_v31 = vadd.f32 %v710_v30, %v253_v28  ;;  %540 = vst [vmem:[%s1139_s26 + $0x78] sm:$0xf] %v508_v29  ;;  %s856_s18 = sshll.u32 %s946_s12, 4  ;;  %s857_s18 = int_to_ptr.vmem [resolvable:$false] %s856_s18 }
  0x79   : > { %p854_p11 = pnand %p853_p0, %p1309_p3  ;;  %s858_s20 = scalar_lea.vmem %s857_s18, 4096 }
  0x7a   : > { %541 = vst [vmem:[%s1139_s26 + $0x7c] sm:$0xf] %v509_v31  ;;  %p859_p7 = scmp.lt.s32.totalorder %s1243_s30, %s857_s18  ;;  %p860_p10 = scmp.lt.s32.totalorder %s858_s20, %s852_s16 }
  0x7b   : > { %p855_p13 = pneg %p854_p11 }
  0x7c   : > { %p861_p12 = por %p860_p10, %p859_p7 }
  0x7e   : > { %p862_p9 = pnand %p861_p12, %p855_p13 }
  0x80   : > { %865 = shalt.err (!%p862_p9)
}
  0x81   : > { %s866_s4 = scalar_lea.hbm %s1239_s7, 2048  ;;  %s870_s29 = scalar_lea.hbm %s1298_s2, 4096 }
  0x82   : > { %p867_p1 = scmp.ne.s32.totalorder %s1239_s7, %s866_s4  ;;  %p871_p5 = scmp.lt.u32.totalorder %s1239_s7, %s1298_s2 }
  0x83   : > { %p872_p4 = scmp.lt.u32.totalorder %s870_s29, %s866_s4  ;;  %p874_p0 = scmp.lt.u32.totalorder %s866_s4, %s1239_s7 }
  0x84   : > { %p868_p6 = pnand %p867_p1, %p1309_p3 }
  0x85   : > { %p873_p8 = por %p872_p4, %p871_p5 }
  0x86   : > { %p869_p2 = pneg %p868_p6 }
  0x87   : > { %p875_p11 = por %p874_p0, %p873_p8 }
  0x89   : > { %p876_p13 = pnand %p875_p11, %p869_p2 }
  0x8b   : > { %879 = shalt.err (!%p876_p13)
}
  0x8c   : > { %s947_s15 = smov 64   ;;  %s948_s19 = smov 4  }
  0x8d   : > { %723 = dma.vmem_to_hbm [thread:$0]  (%p1309_p3), %s1243_s30, 2048, %s1239_s7, %s543_s8, %s947_s15, %s947_s15, %s948_s19  }
  0x8e PF: > { %s572_s26 = sand.u32 1, %s918_s9   ;;  %p1310_p7 = scmp.ne.s32.totalorder %s1304_s24, 0 }
  0x8f   : > { %p1311_p10 = scmp.ge.s32.totalorder %s938_s14, 2  ;;  %s573_s21 = scalar_lea.sflag [#allocation4], %s572_s26 }
  0x91   : > { %p733_p12 = pnand %p1311_p10, %p1310_p7 }
  0x93   : > { %913 = dma.done.wait (!%p733_p12), %s573_s21, 2048  }
  0x94   : > { %915 = vsyncadd (!%p733_p12), %s573_s21, 4294965248  ;;  %s21_s14 = sadd.s32 1, %s938_s14   ;;  %s1312_s9 = smov %s922_s10 }
  0x95   : > { %p18_p9 = scmp.ge.s32.totalorder %s21_s14, 4   ;;  %s1313_s10 = smov %s926_s11 }
  0x96   : > { %s1314_s11 = smov %s1020_s23  ;;  %s1315_s12 = smov %s934_s13 }
  0x97   : > { %s1316_s13 = smov %s1318_s17  ;;  %20 = sbr.rel (!%p18_p9) target bundleno = 8 (0x8), region = 86 }
  0x9e   :  { %578 = vsyncpa [#allocation3], 1 }
  0x9f   :  { %580 = vsyncpa [#allocation3 + $0x1], 1 }
  0xa0   :  { %581 = vsyncpa [#allocation6], 1 }
  0xa1   :  { %583 = vsyncpa [#allocation6 + $0x1], 1 }
  0xa2   :  { %584 = vsyncpa [#allocation4], 1 }
  0xa3   :  { %586 = vsyncpa [#allocation4 + $0x1], 1 }

</bundles_post_ra>
